<compile_context>
chip_gen: v7x
topology: tpu7x:2x2x1
jax: 0.10.0
libtpu: 0.0.40
codegen_flags: <defaults>
</compile_context>

<pallas_src>
import jax
import jax.numpy as jnp
from jax.experimental import pallas as pl
from jax.experimental.pallas import tpu as pltpu

_LANE = 128


def _locked_dropout_kernel(m_ref, x_ref, o_ref):
    # m_ref: (1, tbh) mask tile (already scaled by 1/(1-p)), same dtype as x.
    # x_ref / o_ref: (ts, tbh) seq x lane tile.  Broadcast multiply over rows.
    o_ref[...] = x_ref[...] * m_ref[...]


def _round_up(x, m):
    return -(-x // m) * m


def _vmem_budget_bytes():
    """Generation-aware scoped-VMEM budget (leaves headroom for the compiler)."""
    try:
        cap = int(pltpu.get_tpu_info().vmem_capacity_bytes)
    except Exception:
        cap = 64 << 20  # conservative: v7x has 64 MiB per TensorCore
    # 3/4 of physical, capped at 96 MiB: -> ~96 MiB on v5e/v6e, ~48 MiB on v7x.
    return min(cap * 3 // 4, 96 << 20)


def _choose_tiles(s, bhp, itemsize, block_target):
    """Pick (seq_tile, lane_tile) for an (s, bhp) array.

    - lane tile is a multiple of 128 (or the full padded width bhp),
    - seq tile is a multiple of the packed sublane count (8 f32, 16 bf16,
      32 int8) or the full seq extent,
    - blocks are ~block_target bytes,
    - when the whole seq would fit in one block we still split it into 2-4
      tiles so both v7x TensorCores stream and the pipeline has >1 step.
    """
    sub = {1: 32, 2: 16}.get(itemsize, 8)

    # Lane-axis tile: only shrink below full width if even a sub-row-tall
    # block would blow past the target (very wide hidden sizes).
    tbh = bhp
    if bhp > _LANE and sub * tbh * itemsize > block_target:
        tbh = max(_LANE, (block_target // (sub * itemsize)) // _LANE * _LANE)
        tbh = min(tbh, bhp)

    # Seq-axis tile.
    rows = block_target // max(1, tbh * itemsize)
    rows = max(sub, (rows // sub) * sub)
    if rows >= s:
        # Whole seq fits in one target block: split anyway (v7x 2-TC sharding
        # + DMA/compute pipelining), unless seq is too short to split cleanly.
        if s >= 4 * sub:
            n = 4
        elif s >= 2 * sub:
            n = 2
        else:
            return s, tbh  # full-extent block (always layout-legal)
        rows = min(_round_up(-(-s // n), sub), s)
    return rows, tbh


def locked_dropout(x, key, p=0.5, training=True, donate_x=False):
    """Pallas LockedDropout forward.

    Args:
      x: (seq, batch, hidden) array.
      key: jax.random key used to sample the (batch, hidden) mask.
      p: dropout probability.
      training: if False (or p == 0), x is returned unchanged.
      donate_x: if the caller will not reuse x, alias it to the output buffer.
    """
    if not training or p == 0.0:
        return x

    s, b, h = x.shape
    bh = b * h
    x2 = x.reshape(s, bh)

    # One locked mask, shared across the whole seq axis (inverted dropout).
    # Sampled in x.dtype, matching the PyTorch x.new_empty().bernoulli_()/(1-p).
    keep = jax.random.bernoulli(key, 1.0 - p, (1, bh))
    mask = keep.astype(x.dtype) * jnp.asarray(1.0 / (1.0 - p), dtype=x.dtype)

    # Pad the lane axis to a multiple of 128 for unmasked full-width stores.
    bhp = _round_up(bh, _LANE)
    if bhp != bh:
        x2 = jnp.pad(x2, ((0, 0), (0, bhp - bh)))
        mask = jnp.pad(mask, ((0, 0), (0, bhp - bh)))

    itemsize = jnp.dtype(x.dtype).itemsize
    budget = _vmem_budget_bytes()
    # 4 double-buffered data blocks + mask + slack must fit in `budget`.
    block_target = min(8 << 20, budget // 6)
    ts, tbh = _choose_tiles(s, bhp, itemsize, block_target)

    grid = (pl.cdiv(s, ts), pl.cdiv(bhp, tbh))

    y2 = pl.pallas_call(
        _locked_dropout_kernel,
        out_shape=jax.ShapeDtypeStruct((s, bhp), x.dtype),
        grid_spec=pl.GridSpec(
            grid=grid,
            in_specs=[
                # Mask: constant along the seq axis -> stays VMEM-resident
                # across all seq steps for a given lane tile.
                pl.BlockSpec((1, tbh), lambda i, j: (0, j)),
                # x: stream lane-dense (ts, tbh) slabs.
                pl.BlockSpec((ts, tbh), lambda i, j: (i, j)),
            ],
            out_specs=pl.BlockSpec((ts, tbh), lambda i, j: (i, j)),
        ),
        compiler_params=pltpu.CompilerParams(
            # Independent elementwise tiles on both axes: shardable across
            # TensorCores on v7x, harmless on single-TC v5e/v6e.
            dimension_semantics=("parallel", "parallel"),
            vmem_limit_bytes=int(budget),
        ),
        input_output_aliases=({1: 0} if donate_x else {}),
    )(mask, x2)

    if bhp != bh:
        y2 = y2[:, :bh]
    return y2.reshape(s, b, h)


if __name__ == "__main__":
    root = jax.random.PRNGKey(0)
    data_key, mask_key = jax.random.split(root)

    p = 0.5

    # --- Small shape consistent with the module (seq=8, batch=2, hidden=32) ---
    seq, batch, hidden = 8, 2, 32
    x = jax.random.normal(data_key, (seq, batch, hidden), dtype=jnp.float32)
    y = jax.block_until_ready(locked_dropout(x, mask_key, p=p, training=True))

    # Locked-dropout semantics: same mask across the seq axis.
    ratio = jnp.where(x[0] != 0, y[0] / x[0], 0.0)
    assert jnp.allclose(x * ratio[None, :, :], y, atol=1e-5), \
        "mask is not locked across seq"
    # Mask values are either 0 or 1/(1-p).
    vals_ok = jnp.all(
        jnp.logical_or(jnp.abs(ratio) < 1e-6,
                       jnp.abs(ratio - 1.0 / (1.0 - p)) < 1e-4))
    assert bool(vals_ok), "mask values are not {0, 1/(1-p)}"

    # Eval mode is identity.
    y_eval = locked_dropout(x, mask_key, p=p, training=False)
    assert jnp.array_equal(y_eval, x)

    # --- Larger f32 shape: multi-step seq grid with a partial final tile ---
    seq2, batch2, hidden2 = 300, 8, 256
    x_big = jax.random.normal(data_key, (seq2, batch2, hidden2), dtype=jnp.float32)
    y_big = jax.block_until_ready(
        locked_dropout(x_big, mask_key, p=p, training=True))
    ratio_big = jnp.where(x_big[0] != 0, y_big[0] / x_big[0], 0.0)
    assert jnp.allclose(x_big * ratio_big[None, :, :], y_big, atol=1e-4), \
        "mask is not locked across seq (tiled path)"

    # --- bf16 path: 16-row sublane-aligned seq tiles ---
    seq3, batch3, hidden3 = 64, 4, 96
    x_bf = jax.random.normal(data_key, (seq3, batch3, hidden3),
                             dtype=jnp.bfloat16)
    y_bf = jax.block_until_ready(
        locked_dropout(x_bf, mask_key, p=p, training=True))
    zeros0 = (y_bf[0:1] == 0)
    assert bool(jnp.array_equal(y_bf == 0, jnp.broadcast_to(zeros0, y_bf.shape))), \
        "mask is not locked across seq (bf16 path)"

    print("KERNEL_OK")
</pallas_src>

<mosaic_0001>
module attributes {stable_mosaic.version = 11 : i64} {
  func.func @_locked_dropout_kernel(%arg0: i32, %arg1: i32, %arg2: memref<1x128xf32, #tpu.memory_space<vmem>>, %arg3: memref<8x128xf32, #tpu.memory_space<vmem>>, %arg4: memref<8x128xf32, #tpu.memory_space<vmem>>) attributes {dimension_semantics = [#tpu.dimension_semantics<parallel>, #tpu.dimension_semantics<parallel>], iteration_bounds = array<i64: 1, 1>, scalar_prefetch = 0 : i64, scratch_operands = 0 : i64, tpu.core_type = #tpu.core_type<tc>, window_params = [{transform_indices = @transform_0, window_bounds = array<i64: 1, 128>}, {transform_indices = @transform_1, window_bounds = array<i64: 8, 128>}, {transform_indices = @transform_2, window_bounds = array<i64: 8, 128>}]} {
    %c0 = arith.constant 0 : index
    %c0_0 = arith.constant 0 : index
    %0 = vector.load %arg3[%c0, %c0_0] : memref<8x128xf32, #tpu.memory_space<vmem>>, vector<8x128xf32>
    %c0_1 = arith.constant 0 : index
    %c0_2 = arith.constant 0 : index
    %1 = vector.load %arg2[%c0_1, %c0_2] : memref<1x128xf32, #tpu.memory_space<vmem>>, vector<1x128xf32>
    %2 = vector.broadcast %1 : vector<1x128xf32> to vector<8x128xf32>
    %3 = arith.mulf %0, %2 : vector<8x128xf32>
    %c0_3 = arith.constant 0 : index
    %c0_4 = arith.constant 0 : index
    %4 = vector.load %arg4[%c0_3, %c0_4] : memref<8x128xf32, #tpu.memory_space<vmem>>, vector<8x128xf32>
    tpu.vector_store %arg4[%c0_3, %c0_4], %3 {strides = array<i32>} : memref<8x128xf32, #tpu.memory_space<vmem>>, vector<8x128xf32>,
    return
  }
  func.func @transform_0(%arg0: i32, %arg1: i32) -> (i32, i32) {
    %c0_i32 = arith.constant 0 : i32
    %c0_i32_0 = arith.constant 0 : i32
    return %c0_i32, %arg1 : i32, i32
  }
  func.func @transform_1(%arg0: i32, %arg1: i32) -> (i32, i32) {
    %c0_i32 = arith.constant 0 : i32
    return %arg0, %arg1 : i32, i32
  }
  func.func @transform_2(%arg0: i32, %arg1: i32) -> (i32, i32) {
    %c0_i32 = arith.constant 0 : i32
    return %arg0, %arg1 : i32, i32
  }
}

</mosaic_0001>

<bundles_post_ra>
// kernel: tpu_custom_call.1
= control target key start
LH: loop header
LB: loop body
LE: loop exit
PB: predicated region body
PF: predicated region fallthrough
CT: control target
= control target key end

     0   :  { %7 = vsyncpa [#allocation3], 0  ;;  %s192_s0 = inlined_call_operand.hbm [shape: f32[1,128], index: 0, kind: input, shape index: {}]   ;;  %s193_s1 = inlined_call_operand.hbm [shape: f32[8,128], index: 1, kind: input, shape index: {}]   ;;  %s194_s2 = inlined_call_operand.hbm [shape: f32[8,128], index: 2, kind: output, shape index: {}]  }
   0x1   :  { %8 = vsyncpa [#allocation6], 0 }
   0x2   :  { %9 = vsyncpa [#allocation4], 0  ;;  %s138_s9 = smov [#allocation2]   ;;  %s139_s11 = smov [#allocation5]  }
   0x3   :  { %s16_s10 = sshll.u32 %s138_s9, 4  ;;  %s26_s12 = sshll.u32 %s139_s11, 4  ;;  %s17_s10 = int_to_ptr.vmem [resolvable:$true] %s16_s10  ;;  %s27_s12 = int_to_ptr.vmem [resolvable:$true] %s26_s12 }
   0x4   :  { %s66_s15 = scalar_lea.hbm %s192_s0, 16 }
   0x5   :  { %p67_p0 = scmp.ne.s32.totalorder %s192_s0, %s66_s15  ;;  %p70_p1 = scmp.lt.u32.totalorder %s66_s15, %s192_s0 }
   0x7   :  { %p72_p2 = pnand %p70_p1, %p67_p0 }
   0x9   :  { %75 = shalt.err (!%p72_p2)
}
   0xa   :  { %s76_s20 = scalar_lea.vmem %s17_s10, 16  ;;  %s80_s21 = scalar_lea.vmem %s17_s10, 32 }
   0xb   :  { %p77_p3 = scmp.ne.s32.totalorder %s17_s10, %s76_s20  ;;  %p81_p4 = scmp.lt.s32.totalorder %s17_s10, %s17_s10 }
   0xc   :  { %p82_p5 = scmp.lt.s32.totalorder %s80_s21, %s76_s20 }
   0xe   :  { %p83_p6 = por %p82_p5, %p81_p4 }
  0x10   :  { %p84_p7 = pnand %p83_p6, %p77_p3 }
  0x12   :  { %87 = shalt.err (!%p84_p7)
}
  0x13   :  { %19 = dma.hbm_to_vmem [thread:$0]  %s192_s0, 16, %s17_s10, [#allocation3]  }
  0x14   :  { %s88_s26 = scalar_lea.hbm %s193_s1, 128 }
  0x15   :  { %p89_p8 = scmp.ne.s32.totalorder %s193_s1, %s88_s26  ;;  %p92_p9 = scmp.lt.u32.totalorder %s88_s26, %s193_s1 }
  0x17   :  { %p94_p10 = pnand %p92_p9, %p89_p8 }
  0x19   :  { %97 = shalt.err (!%p94_p10)
}
  0x1a   :  { %s98_s3 = scalar_lea.vmem %s27_s12, 128  ;;  %p103_p12 = scmp.lt.s32.totalorder %s27_s12, %s27_s12 }
  0x1b   :  { %p99_p11 = scmp.ne.s32.totalorder %s27_s12, %s98_s3  ;;  %p104_p13 = scmp.lt.s32.totalorder %s98_s3, %s98_s3 }
  0x1d   :  { %p105_p0 = por %p104_p13, %p103_p12 }
  0x1f   :  { %p106_p1 = pnand %p105_p0, %p99_p11 }
  0x21   :  { %109 = shalt.err (!%p106_p1)
}
  0x22   :  { %29 = dma.hbm_to_vmem [thread:$0]  %s193_s1, 128, %s27_s12, [#allocation6]  }
  0x23   :  { %132 = dma.done.wait [#allocation3], 16  }
  0x24   :  { %133 = vsyncadd [#allocation3], 4294967280 }
  0x25   :  { %134 = dma.done.wait [#allocation6], 128  }
  0x26   :  { %135 = vsyncadd [#allocation6], 4294967168  ;;  %s140_s5 = smov [#allocation7]   ;;  %v36_v0 = vld [vmem:[#allocation5] sm:$0xff]  ;;  %v62_v1 = vld [vmem:[#allocation2] ss:$0 sm:$0xff] }
  0x27   :  { %s52_s6 = sshll.u32 %s140_s5, 4  ;;  %v44_v2 = vmul.f32 %v62_v1, %v36_v0  ;;  %s53_s6 = int_to_ptr.vmem [resolvable:$true] %s52_s6 }
  0x28   :  { %s110_s7 = scalar_lea.vmem %s53_s6, 128  ;;  %p115_p3 = scmp.lt.s32.totalorder %s53_s6, %s53_s6 }
  0x29   :  { %45 = vst [vmem:[#allocation7] sm:$0xff] %v44_v2  ;;  %p111_p2 = scmp.ne.s32.totalorder %s53_s6, %s110_s7  ;;  %p116_p4 = scmp.lt.s32.totalorder %s110_s7, %s110_s7 }
  0x2b   :  { %p117_p5 = por %p116_p4, %p115_p3 }
  0x2d   :  { %p118_p6 = pnand %p117_p5, %p111_p2 }
  0x2f   :  { %121 = shalt.err (!%p118_p6)
}
  0x30   :  { %s122_s9 = scalar_lea.hbm %s194_s2, 128 }
  0x31   :  { %p123_p7 = scmp.ne.s32.totalorder %s194_s2, %s122_s9  ;;  %p126_p8 = scmp.lt.u32.totalorder %s122_s9, %s194_s2 }
  0x33   :  { %p128_p9 = pnand %p126_p8, %p123_p7 }
  0x35   :  { %131 = shalt.err (!%p128_p9)
}
  0x36   :  { %55 = dma.vmem_to_hbm [thread:$0]  %s53_s6, 128, %s194_s2, [#allocation4]  }
  0x37   :  { %136 = dma.done.wait [#allocation4], 128  }
  0x38   :  { %137 = vsyncadd [#allocation4], 4294967168 }
  0x39   :  { %59 = vsyncpa [#allocation3], 1 }
  0x3a   :  { %60 = vsyncpa [#allocation6], 1 }
  0x3b   :  { %61 = vsyncpa [#allocation4], 1 }

</bundles_post_ra>
